<compile_context>
chip_gen: v7x
topology: tpu7x:2x2x1
jax: 0.10.0
libtpu: 0.0.40
codegen_flags: <defaults>
</compile_context>

<pallas_src>
import functools

import jax
import jax.numpy as jnp
from jax.experimental import pallas as pl
from jax.experimental.pallas import tpu as pltpu

LN_EPS = 1e-5  # PyTorch nn.LayerNorm default


def _round_up(x, m):
    return (x + m - 1) // m * m


def _masked_layernorm(h, gamma, beta, true_n, pad_n):
    """LayerNorm over the last axis, exact when that axis is zero-padded from
    true_n to pad_n lanes (gamma/beta are zero-padded, so padded lanes -> 0)."""
    if pad_n == true_n:
        mean = jnp.mean(h, axis=-1, keepdims=True)
        var = jnp.mean((h - mean) ** 2, axis=-1, keepdims=True)
    else:
        inv_n = 1.0 / float(true_n)
        lane = jax.lax.broadcasted_iota(jnp.int32, h.shape, h.ndim - 1)
        mask = (lane < true_n).astype(h.dtype)
        mean = jnp.sum(h * mask, axis=-1, keepdims=True) * inv_n
        var = jnp.sum(mask * (h - mean) ** 2, axis=-1, keepdims=True) * inv_n
    inv = jax.lax.rsqrt(var + LN_EPS)
    return (h - mean) * inv * gamma + beta


def _mxu_dot(a, b):
    # Full-precision f32 matmul (multi-pass) for the f32 path; default for bf16.
    prec = jax.lax.Precision.HIGHEST if a.dtype == jnp.float32 else None
    return jnp.dot(a, b, preferred_element_type=jnp.float32, precision=prec)


def actor_kernel(layer_norm, full1, full2, f1_pad, f2_pad, *refs):
    if layer_norm:
        (x_ref, w1_ref, b1_ref, g1_ref, be1_ref,
         w2_ref, b2_ref, g2_ref, be2_ref,
         w3_ref, b3_ref, o_ref) = refs
    else:
        (x_ref, w1_ref, b1_ref,
         w2_ref, b2_ref,
         w3_ref, b3_ref, o_ref) = refs
        g1_ref = be1_ref = g2_ref = be2_ref = None

    w_dtype = w1_ref.dtype  # MXU operand dtype (f32 or bf16)
    x = x_ref[...].astype(w_dtype)

    # --- layer 1: Linear (+ LayerNorm) + ReLU  -> lane-dense (tile_b, f1_pad)
    h1 = _mxu_dot(x, w1_ref[...])
    h1 = h1 + b1_ref[...]                       # (1, f1_pad) row broadcast, f32
    if layer_norm:
        h1 = _masked_layernorm(h1, g1_ref[...], be1_ref[...], full1, f1_pad)
    h1 = jnp.maximum(h1, 0.0)

    # --- layer 2: Linear (+ LayerNorm) + ReLU  -> lane-dense (tile_b, f2_pad)
    h2 = _mxu_dot(h1.astype(w_dtype), w2_ref[...])
    h2 = h2 + b2_ref[...]
    if layer_norm:
        h2 = _masked_layernorm(h2, g2_ref[...], be2_ref[...], full2, f2_pad)
    h2 = jnp.maximum(h2, 0.0)

    # --- final layer: Linear + tanh (unpadded n_actions lanes, minimal bytes)
    out = _mxu_dot(h2.astype(w_dtype), w3_ref[...])
    out = out + b3_ref[...]
    o_ref[...] = jnp.tanh(out).astype(o_ref.dtype)


def prepare_actor_params(params, *, layer_norm=True, weight_dtype=jnp.float32):
    """One-time parameter prep (pad hidden dims to 128, reshape, cast)."""
    (w1, b1, g1, be1, w2, b2, g2, be2, w3, b3) = params
    state_dim, full1 = w1.shape
    full2 = w2.shape[1]
    n_actions = w3.shape[1]
    f1_pad = _round_up(full1, 128)
    f2_pad = _round_up(full2, 128)

    f32 = jnp.float32
    w1_p = jnp.pad(w1, ((0, 0), (0, f1_pad - full1))).astype(weight_dtype)
    w2_p = jnp.pad(w2, ((0, f1_pad - full1), (0, f2_pad - full2))).astype(weight_dtype)
    w3_p = jnp.pad(w3, ((0, f2_pad - full2), (0, 0))).astype(weight_dtype)

    b1_r = jnp.pad(b1.astype(f32), (0, f1_pad - full1)).reshape(1, f1_pad)
    b2_r = jnp.pad(b2.astype(f32), (0, f2_pad - full2)).reshape(1, f2_pad)
    b3_r = b3.astype(f32).reshape(1, n_actions)

    if layer_norm:
        g1_r = jnp.pad(g1.astype(f32), (0, f1_pad - full1)).reshape(1, f1_pad)
        be1_r = jnp.pad(be1.astype(f32), (0, f1_pad - full1)).reshape(1, f1_pad)
        g2_r = jnp.pad(g2.astype(f32), (0, f2_pad - full2)).reshape(1, f2_pad)
        be2_r = jnp.pad(be2.astype(f32), (0, f2_pad - full2)).reshape(1, f2_pad)
        weight_args = (w1_p, b1_r, g1_r, be1_r,
                       w2_p, b2_r, g2_r, be2_r, w3_p, b3_r)
    else:
        weight_args = (w1_p, b1_r, w2_p, b2_r, w3_p, b3_r)

    meta = dict(state_dim=state_dim, full1=full1, full2=full2,
                n_actions=n_actions, f1_pad=f1_pad, f2_pad=f2_pad,
                layer_norm=layer_norm)
    return weight_args, meta


def actor_forward_prepared(x, weight_args, meta, *, tile_b_max=1024,
                           vmem_budget_bytes=24 * 1024 * 1024):
    """Actor forward with pre-prepared params; pipelined over batch tiles."""
    layer_norm = meta["layer_norm"]
    state_dim = meta["state_dim"]
    n_actions = meta["n_actions"]
    full1, full2 = meta["full1"], meta["full2"]
    f1_pad, f2_pad = meta["f1_pad"], meta["f2_pad"]

    batch = x.shape[0]
    assert x.shape[1] == state_dim

    weight_bytes = sum(int(a.size) * a.dtype.itemsize for a in weight_args)

    # VMEM budget: double-buffered x/out tiles + f32 h1/h2 activations
    # + single-buffered weights (pipeline_mode=Buffered(1)) + slack.
    per_row = 2 * (state_dim + n_actions) * 4 + 2 * (f1_pad + f2_pad) * 4
    avail = max(vmem_budget_bytes - weight_bytes - (2 << 20), 8 * per_row)
    tile_cap = max(8, (avail // per_row) // 8 * 8)
    tile_b_max = max(8, min(tile_b_max, tile_cap))

    # Pick tile/steps: >= 2 (and an even count of) grid steps when the batch
    # allows, so v7x's 2 TensorCores both get balanced work; minimal last-tile
    # padding (tile is only a multiple of 8).
    b8 = _round_up(max(batch, 8), 8)
    tile_b = min(tile_b_max, b8)
    steps = pl.cdiv(b8, tile_b)
    if steps == 1 and b8 > 8:
        steps = 2
    if steps > 1 and steps % 2 == 1:
        steps += 1
    tile_b = _round_up(pl.cdiv(b8, steps), 8)
    steps = pl.cdiv(b8, tile_b)
    b_pad = steps * tile_b

    x_p = x.astype(jnp.float32)
    if b_pad != batch:
        x_p = jnp.pad(x_p, ((0, b_pad - batch), (0, 0)))

    def const_spec(arr):
        # Whole array, same block every grid step -> DMA'd once, kept resident,
        # single-buffered (no wasted double-buffer VMEM).
        return pl.BlockSpec(arr.shape, lambda i: (0, 0),
                            pipeline_mode=pl.Buffered(1))

    x_spec = pl.BlockSpec((tile_b, state_dim), lambda i: (i, 0))
    out_spec = pl.BlockSpec((tile_b, n_actions), lambda i: (i, 0))
    in_specs = [x_spec] + [const_spec(a) for a in weight_args]

    flops = 2 * b_pad * (state_dim * f1_pad + f1_pad * f2_pad
                         + f2_pad * n_actions)
    transcendentals = b_pad * (n_actions + (2 if layer_norm else 0))
    bytes_accessed = b_pad * (state_dim + n_actions) * 4 + weight_bytes

    out_padded = pl.pallas_call(
        functools.partial(actor_kernel, layer_norm, full1, full2,
                          f1_pad, f2_pad),
        out_shape=jax.ShapeDtypeStruct((b_pad, n_actions), jnp.float32),
        grid=(steps,),
        in_specs=in_specs,
        out_specs=out_spec,
        compiler_params=pltpu.CompilerParams(
            dimension_semantics=("parallel",),
            vmem_limit_bytes=32 * 1024 * 1024),
        cost_estimate=pl.CostEstimate(
            flops=int(flops),
            transcendentals=int(transcendentals),
            bytes_accessed=int(bytes_accessed)),
    )(x_p, *weight_args)

    return out_padded[:batch] if b_pad != batch else out_padded


def actor_forward(x, params, *, layer_norm=True, weight_dtype=jnp.float32,
                  tile_b_max=1024):
    """Convenience wrapper (prepares params on the fly; prefer preparing once)."""
    weight_args, meta = prepare_actor_params(
        params, layer_norm=layer_norm, weight_dtype=weight_dtype)
    return actor_forward_prepared(x, weight_args, meta, tile_b_max=tile_b_max)


# ---------------------------------------------------------------------------
# Deterministic parameter initialization (mirrors nn.Linear / kaiming_uniform).
# ---------------------------------------------------------------------------
def _kaiming_uniform(key, fan_in, fan_out):
    bound = jnp.sqrt(2.0) * jnp.sqrt(3.0 / fan_in)
    return jax.random.uniform(key, (fan_in, fan_out), jnp.float32, -bound, bound)


def _default_linear(key, fan_in, fan_out):
    bound = 1.0 / jnp.sqrt(fan_in)
    return jax.random.uniform(key, (fan_in, fan_out), jnp.float32, -bound, bound)


def _bias(key, fan_in, fan_out):
    bound = 1.0 / jnp.sqrt(fan_in)
    return jax.random.uniform(key, (fan_out,), jnp.float32, -bound, bound)


def init_actor_params(key, state_dim, full1_dim, full2_dim, n_actions):
    ks = jax.random.split(key, 6)
    w1 = _kaiming_uniform(ks[0], state_dim, full1_dim)
    b1 = _bias(ks[1], state_dim, full1_dim)
    g1 = jnp.ones((full1_dim,), jnp.float32)
    be1 = jnp.zeros((full1_dim,), jnp.float32)

    w2 = _kaiming_uniform(ks[2], full1_dim, full2_dim)
    b2 = _bias(ks[3], full1_dim, full2_dim)
    g2 = jnp.ones((full2_dim,), jnp.float32)
    be2 = jnp.zeros((full2_dim,), jnp.float32)

    w3 = _default_linear(ks[4], full2_dim, n_actions)
    b3 = _bias(ks[5], full2_dim, n_actions)
    return (w1, b1, g1, be1, w2, b2, g2, be2, w3, b3)


def actor_forward_ref(x, params, *, layer_norm=True):
    """Pure-JAX reference (full-precision f32 matmuls)."""
    (w1, b1, g1, be1, w2, b2, g2, be2, w3, b3) = params
    hi = jax.lax.Precision.HIGHEST

    def ln(h, g, b):
        mean = jnp.mean(h, axis=-1, keepdims=True)
        var = jnp.mean((h - mean) ** 2, axis=-1, keepdims=True)
        return (h - mean) * jax.lax.rsqrt(var + LN_EPS) * g + b

    h = jnp.dot(x, w1, precision=hi) + b1
    if layer_norm:
        h = ln(h, g1, be1)
    h = jnp.maximum(h, 0.0)
    h = jnp.dot(h, w2, precision=hi) + b2
    if layer_norm:
        h = ln(h, g2, be2)
    h = jnp.maximum(h, 0.0)
    return jnp.tanh(jnp.dot(h, w3, precision=hi) + b3)


if __name__ == "__main__":
    # Small shapes consistent with the module: stateDim=8, full1Dim=32,
    # full2Dim=32, nActions=4, batch=2.
    batch, state_dim, full1_dim, full2_dim, n_actions = 2, 8, 32, 32, 4

    key = jax.random.PRNGKey(0)
    k_x, k_p = jax.random.split(key)
    x = jax.random.normal(k_x, (batch, state_dim), jnp.float32)
    params = init_actor_params(k_p, state_dim, full1_dim, full2_dim, n_actions)

    # Hoisted one-time param prep (f32 and bf16 variants, LN on/off).
    prep_ln = prepare_actor_params(params, layer_norm=True)
    prep_noln = prepare_actor_params(params, layer_norm=False)
    prep_bf16 = prepare_actor_params(params, layer_norm=True,
                                     weight_dtype=jnp.bfloat16)

    # f32 weights, LayerNorm on: tight tolerance vs. reference.
    out = jax.block_until_ready(actor_forward_prepared(x, *prep_ln))
    ref = actor_forward_ref(x, params, layer_norm=True)
    assert out.shape == (batch, n_actions)
    assert jnp.allclose(out, ref, atol=1e-4, rtol=1e-4), (out, ref)

    # layerNorm=False path.
    out2 = jax.block_until_ready(actor_forward_prepared(x, *prep_noln))
    ref2 = actor_forward_ref(x, params, layer_norm=False)
    assert jnp.allclose(out2, ref2, atol=1e-4, rtol=1e-4), (out2, ref2)

    # bf16-weight fast path (MXU bf16 operands, f32 accumulation) — loose tol.
    out3 = jax.block_until_ready(actor_forward_prepared(x, *prep_bf16))
    assert jnp.allclose(out3, ref, atol=5e-2, rtol=5e-2), (out3, ref)

    # Batch large enough for multiple grid steps (and a partial last tile).
    xb = jax.random.normal(k_x, (1030, state_dim), jnp.float32)
    outb = jax.block_until_ready(actor_forward_prepared(xb, *prep_ln))
    refb = actor_forward_ref(xb, params, layer_norm=True)
    assert outb.shape == (1030, n_actions)
    assert jnp.allclose(outb, refb, atol=1e-4, rtol=1e-4)

    print("KERNEL_OK")
</pallas_src>

<mosaic_0001>
module attributes {stable_mosaic.version = 11 : i64} {
  func.func @actor_kernel(%arg0: i32, %arg1: memref<8x8xf32, #tpu.memory_space<vmem>>, %arg2: memref<8x128xf32, #tpu.memory_space<vmem>>, %arg3: memref<1x128xf32, #tpu.memory_space<vmem>>, %arg4: memref<1x128xf32, #tpu.memory_space<vmem>>, %arg5: memref<1x128xf32, #tpu.memory_space<vmem>>, %arg6: memref<128x128xf32, #tpu.memory_space<vmem>>, %arg7: memref<1x128xf32, #tpu.memory_space<vmem>>, %arg8: memref<1x128xf32, #tpu.memory_space<vmem>>, %arg9: memref<1x128xf32, #tpu.memory_space<vmem>>, %arg10: memref<128x4xf32, #tpu.memory_space<vmem>>, %arg11: memref<1x4xf32, #tpu.memory_space<vmem>>, %arg12: memref<8x4xf32, #tpu.memory_space<vmem>>) attributes {dimension_semantics = [#tpu.dimension_semantics<parallel>], iteration_bounds = array<i64: 1>, scalar_prefetch = 0 : i64, scratch_operands = 0 : i64, tpu.core_type = #tpu.core_type<tc>, window_params = [{transform_indices = @transform_0, window_bounds = array<i64: 8, 8>}, {pipeline_mode = #tpu.pipeline_mode<synchronous>, transform_indices = @transform_1, window_bounds = array<i64: 8, 128>}, {pipeline_mode = #tpu.pipeline_mode<synchronous>, transform_indices = @transform_2, window_bounds = array<i64: 1, 128>}, {pipeline_mode = #tpu.pipeline_mode<synchronous>, transform_indices = @transform_3, window_bounds = array<i64: 1, 128>}, {pipeline_mode = #tpu.pipeline_mode<synchronous>, transform_indices = @transform_4, window_bounds = array<i64: 1, 128>}, {pipeline_mode = #tpu.pipeline_mode<synchronous>, transform_indices = @transform_5, window_bounds = array<i64: 128, 128>}, {pipeline_mode = #tpu.pipeline_mode<synchronous>, transform_indices = @transform_6, window_bounds = array<i64: 1, 128>}, {pipeline_mode = #tpu.pipeline_mode<synchronous>, transform_indices = @transform_7, window_bounds = array<i64: 1, 128>}, {pipeline_mode = #tpu.pipeline_mode<synchronous>, transform_indices = @transform_8, window_bounds = array<i64: 1, 128>}, {pipeline_mode = #tpu.pipeline_mode<synchronous>, transform_indices = @transform_9, window_bounds = array<i64: 128, 4>}, {pipeline_mode = #tpu.pipeline_mode<synchronous>, transform_indices = @transform_10, window_bounds = array<i64: 1, 4>}, {transform_indices = @transform_11, window_bounds = array<i64: 8, 4>}]} {
    %c0 = arith.constant 0 : index
    %c0_0 = arith.constant 0 : index
    %0 = vector.load %arg1[%c0, %c0_0] : memref<8x8xf32, #tpu.memory_space<vmem>>, vector<8x8xf32>
    %c0_1 = arith.constant 0 : index
    %c0_2 = arith.constant 0 : index
    %1 = vector.load %arg2[%c0_1, %c0_2] : memref<8x128xf32, #tpu.memory_space<vmem>>, vector<8x128xf32>
    %cst = arith.constant dense<0.000000e+00> : vector<8x128xf32>
    %2 = tpu.matmul %0, %1, %cst {dimension_numbers = #tpu.dot_dimension_numbers<[1], [0], [0], [1], [0, 0, 1, 1], [], []>, precision = #tpu.contract_precision<fp32>} : vector<8x8xf32>, vector<8x128xf32>, vector<8x128xf32> -> vector<8x128xf32>
    %c0_3 = arith.constant 0 : index
    %c0_4 = arith.constant 0 : index
    %3 = vector.load %arg3[%c0_3, %c0_4] : memref<1x128xf32, #tpu.memory_space<vmem>>, vector<1x128xf32>
    %4 = vector.broadcast %3 : vector<1x128xf32> to vector<8x128xf32>
    %5 = arith.addf %2, %4 : vector<8x128xf32>
    %c0_5 = arith.constant 0 : index
    %c0_6 = arith.constant 0 : index
    %6 = vector.load %arg4[%c0_5, %c0_6] : memref<1x128xf32, #tpu.memory_space<vmem>>, vector<1x128xf32>
    %c0_7 = arith.constant 0 : index
    %c0_8 = arith.constant 0 : index
    %7 = vector.load %arg5[%c0_7, %c0_8] : memref<1x128xf32, #tpu.memory_space<vmem>>, vector<1x128xf32>
    %8 = tpu.iota {dimensions = array<i32: 1>} : vector<8x128xi32>
    %c32_i32 = arith.constant 32 : i32
    %9 = vector.broadcast %c32_i32 : i32 to vector<8x128xi32>
    %10 = arith.cmpi slt, %8, %9 : vector<8x128xi32>
    %11 = arith.extui %10 : vector<8x128xi1> to vector<8x128xi32>
    %12 = arith.sitofp %11 : vector<8x128xi32> to vector<8x128xf32>
    %13 = arith.mulf %5, %12 : vector<8x128xf32>
    %cst_9 = arith.constant dense<0.000000e+00> : vector<8xf32>
    %14 = vector.multi_reduction <add>, %13, %cst_9 [1] : vector<8x128xf32> to vector<8xf32>
    %15 = vector.shape_cast %14 : vector<8xf32> to vector<8x1xf32>
    %cst_10 = arith.constant 3.125000e-02 : f32
    %16 = vector.broadcast %cst_10 : f32 to vector<8x1xf32>
    %17 = arith.mulf %15, %16 : vector<8x1xf32>
    %18 = vector.broadcast %17 : vector<8x1xf32> to vector<8x128xf32>
    %19 = arith.subf %5, %18 : vector<8x128xf32>
    %20 = arith.mulf %19, %19 : vector<8x128xf32>
    %21 = arith.mulf %12, %20 : vector<8x128xf32>
    %cst_11 = arith.constant dense<0.000000e+00> : vector<8xf32>
    %22 = vector.multi_reduction <add>, %21, %cst_11 [1] : vector<8x128xf32> to vector<8xf32>
    %23 = vector.shape_cast %22 : vector<8xf32> to vector<8x1xf32>
    %cst_12 = arith.constant 3.125000e-02 : f32
    %24 = vector.broadcast %cst_12 : f32 to vector<8x1xf32>
    %25 = arith.mulf %23, %24 : vector<8x1xf32>
    %cst_13 = arith.constant 9.99999974E-6 : f32
    %26 = vector.broadcast %cst_13 : f32 to vector<8x1xf32>
    %27 = arith.addf %25, %26 : vector<8x1xf32>
    %28 = math.rsqrt %27 : vector<8x1xf32>
    %29 = vector.broadcast %17 : vector<8x1xf32> to vector<8x128xf32>
    %30 = arith.subf %5, %29 : vector<8x128xf32>
    %31 = vector.broadcast %28 : vector<8x1xf32> to vector<8x128xf32>
    %32 = arith.mulf %30, %31 : vector<8x128xf32>
    %33 = vector.broadcast %6 : vector<1x128xf32> to vector<8x128xf32>
    %34 = arith.mulf %32, %33 : vector<8x128xf32>
    %35 = vector.broadcast %7 : vector<1x128xf32> to vector<8x128xf32>
    %36 = arith.addf %34, %35 : vector<8x128xf32>
    %cst_14 = arith.constant 0.000000e+00 : f32
    %37 = vector.broadcast %cst_14 : f32 to vector<8x128xf32>
    %38 = arith.maximumf %36, %37 : vector<8x128xf32>
    %c0_15 = arith.constant 0 : index
    %c0_16 = arith.constant 0 : index
    %39 = vector.load %arg6[%c0_15, %c0_16] : memref<128x128xf32, #tpu.memory_space<vmem>>, vector<128x128xf32>
    %cst_17 = arith.constant dense<0.000000e+00> : vector<8x128xf32>
    %40 = tpu.matmul %38, %39, %cst_17 {dimension_numbers = #tpu.dot_dimension_numbers<[1], [0], [0], [1], [0, 0, 1, 1], [], []>, precision = #tpu.contract_precision<fp32>} : vector<8x128xf32>, vector<128x128xf32>, vector<8x128xf32> -> vector<8x128xf32>
    %c0_18 = arith.constant 0 : index
    %c0_19 = arith.constant 0 : index
    %41 = vector.load %arg7[%c0_18, %c0_19] : memref<1x128xf32, #tpu.memory_space<vmem>>, vector<1x128xf32>
    %42 = vector.broadcast %41 : vector<1x128xf32> to vector<8x128xf32>
    %43 = arith.addf %40, %42 : vector<8x128xf32>
    %c0_20 = arith.constant 0 : index
    %c0_21 = arith.constant 0 : index
    %44 = vector.load %arg8[%c0_20, %c0_21] : memref<1x128xf32, #tpu.memory_space<vmem>>, vector<1x128xf32>
    %c0_22 = arith.constant 0 : index
    %c0_23 = arith.constant 0 : index
    %45 = vector.load %arg9[%c0_22, %c0_23] : memref<1x128xf32, #tpu.memory_space<vmem>>, vector<1x128xf32>
    %46 = tpu.iota {dimensions = array<i32: 1>} : vector<8x128xi32>
    %c32_i32_24 = arith.constant 32 : i32
    %47 = vector.broadcast %c32_i32_24 : i32 to vector<8x128xi32>
    %48 = arith.cmpi slt, %46, %47 : vector<8x128xi32>
    %49 = arith.extui %48 : vector<8x128xi1> to vector<8x128xi32>
    %50 = arith.sitofp %49 : vector<8x128xi32> to vector<8x128xf32>
    %51 = arith.mulf %43, %50 : vector<8x128xf32>
    %cst_25 = arith.constant dense<0.000000e+00> : vector<8xf32>
    %52 = vector.multi_reduction <add>, %51, %cst_25 [1] : vector<8x128xf32> to vector<8xf32>
    %53 = vector.shape_cast %52 : vector<8xf32> to vector<8x1xf32>
    %cst_26 = arith.constant 3.125000e-02 : f32
    %54 = vector.broadcast %cst_26 : f32 to vector<8x1xf32>
    %55 = arith.mulf %53, %54 : vector<8x1xf32>
    %56 = vector.broadcast %55 : vector<8x1xf32> to vector<8x128xf32>
    %57 = arith.subf %43, %56 : vector<8x128xf32>
    %58 = arith.mulf %57, %57 : vector<8x128xf32>
    %59 = arith.mulf %50, %58 : vector<8x128xf32>
    %cst_27 = arith.constant dense<0.000000e+00> : vector<8xf32>
    %60 = vector.multi_reduction <add>, %59, %cst_27 [1] : vector<8x128xf32> to vector<8xf32>
    %61 = vector.shape_cast %60 : vector<8xf32> to vector<8x1xf32>
    %cst_28 = arith.constant 3.125000e-02 : f32
    %62 = vector.broadcast %cst_28 : f32 to vector<8x1xf32>
    %63 = arith.mulf %61, %62 : vector<8x1xf32>
    %cst_29 = arith.constant 9.99999974E-6 : f32
    %64 = vector.broadcast %cst_29 : f32 to vector<8x1xf32>
    %65 = arith.addf %63, %64 : vector<8x1xf32>
    %66 = math.rsqrt %65 : vector<8x1xf32>
    %67 = vector.broadcast %55 : vector<8x1xf32> to vector<8x128xf32>
    %68 = arith.subf %43, %67 : vector<8x128xf32>
    %69 = vector.broadcast %66 : vector<8x1xf32> to vector<8x128xf32>
    %70 = arith.mulf %68, %69 : vector<8x128xf32>
    %71 = vector.broadcast %44 : vector<1x128xf32> to vector<8x128xf32>
    %72 = arith.mulf %70, %71 : vector<8x128xf32>
    %73 = vector.broadcast %45 : vector<1x128xf32> to vector<8x128xf32>
    %74 = arith.addf %72, %73 : vector<8x128xf32>
    %cst_30 = arith.constant 0.000000e+00 : f32
    %75 = vector.broadcast %cst_30 : f32 to vector<8x128xf32>
    %76 = arith.maximumf %74, %75 : vector<8x128xf32>
    %c0_31 = arith.constant 0 : index
    %c0_32 = arith.constant 0 : index
    %77 = vector.load %arg10[%c0_31, %c0_32] : memref<128x4xf32, #tpu.memory_space<vmem>>, vector<128x4xf32>
    %cst_33 = arith.constant dense<0.000000e+00> : vector<8x4xf32>
    %78 = tpu.matmul %76, %77, %cst_33 {dimension_numbers = #tpu.dot_dimension_numbers<[1], [0], [0], [1], [0, 0, 1, 1], [], []>, precision = #tpu.contract_precision<fp32>} : vector<8x128xf32>, vector<128x4xf32>, vector<8x4xf32> -> vector<8x4xf32>
    %c0_34 = arith.constant 0 : index
    %c0_35 = arith.constant 0 : index
    %79 = vector.load %arg11[%c0_34, %c0_35] : memref<1x4xf32, #tpu.memory_space<vmem>>, vector<1x4xf32>
    %80 = vector.broadcast %79 : vector<1x4xf32> to vector<8x4xf32>
    %81 = arith.addf %78, %80 : vector<8x4xf32>
    %82 = math.tanh %81 : vector<8x4xf32>
    %c0_36 = arith.constant 0 : index
    %c0_37 = arith.constant 0 : index
    %83 = vector.load %arg12[%c0_36, %c0_37] : memref<8x4xf32, #tpu.memory_space<vmem>>, vector<8x4xf32>
    tpu.vector_store %arg12[%c0_36, %c0_37], %82 {strides = array<i32>} : memref<8x4xf32, #tpu.memory_space<vmem>>, vector<8x4xf32>,
    return
  }
  func.func @transform_0(%arg0: i32) -> (i32, i32) {
    %c0_i32 = arith.constant 0 : i32
    %c0_i32_0 = arith.constant 0 : i32
    return %arg0, %c0_i32 : i32, i32
  }
  func.func @transform_1(%arg0: i32) -> (i32, i32) {
    %c0_i32 = arith.constant 0 : i32
    %c0_i32_0 = arith.constant 0 : i32
    %c0_i32_1 = arith.constant 0 : i32
    return %c0_i32, %c0_i32_0 : i32, i32
  }
  func.func @transform_2(%arg0: i32) -> (i32, i32) {
    %c0_i32 = arith.constant 0 : i32
    %c0_i32_0 = arith.constant 0 : i32
    %c0_i32_1 = arith.constant 0 : i32
    return %c0_i32, %c0_i32_0 : i32, i32
  }
  func.func @transform_3(%arg0: i32) -> (i32, i32) {
    %c0_i32 = arith.constant 0 : i32
    %c0_i32_0 = arith.constant 0 : i32
    %c0_i32_1 = arith.constant 0 : i32
    return %c0_i32, %c0_i32_0 : i32, i32
  }
  func.func @transform_4(%arg0: i32) -> (i32, i32) {
    %c0_i32 = arith.constant 0 : i32
    %c0_i32_0 = arith.constant 0 : i32
    %c0_i32_1 = arith.constant 0 : i32
    return %c0_i32, %c0_i32_0 : i32, i32
  }
  func.func @transform_5(%arg0: i32) -> (i32, i32) {
    %c0_i32 = arith.constant 0 : i32
    %c0_i32_0 = arith.constant 0 : i32
    %c0_i32_1 = arith.constant 0 : i32
    return %c0_i32, %c0_i32_0 : i32, i32
  }
  func.func @transform_6(%arg0: i32) -> (i32, i32) {
    %c0_i32 = arith.constant 0 : i32
    %c0_i32_0 = arith.constant 0 : i32
    %c0_i32_1 = arith.constant 0 : i32
    return %c0_i32, %c0_i32_0 : i32, i32
  }
  func.func @transform_7(%arg0: i32) -> (i32, i32) {
    %c0_i32 = arith.constant 0 : i32
    %c0_i32_0 = arith.constant 0 : i32
    %c0_i32_1 = arith.constant 0 : i32
    return %c0_i32, %c0_i32_0 : i32, i32
  }
  func.func @transform_8(%arg0: i32) -> (i32, i32) {
    %c0_i32 = arith.constant 0 : i32
    %c0_i32_0 = arith.constant 0 : i32
    %c0_i32_1 = arith.constant 0 : i32
    return %c0_i32, %c0_i32_0 : i32, i32
  }
  func.func @transform_9(%arg0: i32) -> (i32, i32) {
    %c0_i32 = arith.constant 0 : i32
    %c0_i32_0 = arith.constant 0 : i32
    %c0_i32_1 = arith.constant 0 : i32
    return %c0_i32, %c0_i32_0 : i32, i32
  }
  func.func @transform_10(%arg0: i32) -> (i32, i32) {
    %c0_i32 = arith.constant 0 : i32
    %c0_i32_0 = arith.constant 0 : i32
    %c0_i32_1 = arith.constant 0 : i32
    return %c0_i32, %c0_i32_0 : i32, i32
  }
  func.func @transform_11(%arg0: i32) -> (i32, i32) {
    %c0_i32 = arith.constant 0 : i32
    %c0_i32_0 = arith.constant 0 : i32
    return %arg0, %c0_i32 : i32, i32
  }
}

</mosaic_0001>

<bundles_post_ra>
// kernel: tpu_custom_call.1
= control target key start
LH: loop header
LB: loop body
LE: loop exit
PB: predicated region body
PF: predicated region fallthrough
CT: control target
= control target key end

     0   :  { %vm47_vm0 = vcmask 64512   ;;  %v2900_v0 = vmov 0.0   ;;  %vm2901_vm1 = vmmov 0   ;;  %v499_v14 = vlaneseq  ;;  %s3642_s1 = inlined_call_operand.vmem [shape: f32[8,128], index: 1, kind: input, shape index: {}]   ;;  %s3643_s0 = inlined_call_operand.vmem [shape: f32[8,8], index: 0, kind: input, shape index: {}]   ;;  %s3644_s2 = inlined_call_operand.vmem [shape: f32[1,128], index: 2, kind: input, shape index: {}]   ;;  %s3645_s5 = inlined_call_operand.vmem [shape: f32[128,128], index: 5, kind: input, shape index: {}]   ;;  %s3646_s3 = inlined_call_operand.vmem [shape: f32[1,128], index: 3, kind: input, shape index: {}]   ;;  %s3647_s4 = inlined_call_operand.vmem [shape: f32[1,128], index: 4, kind: input, shape index: {}]   ;;  %s3648_s6 = inlined_call_operand.vmem [shape: f32[1,128], index: 6, kind: input, shape index: {}]   ;;  %s3649_s9 = inlined_call_operand.vmem [shape: f32[128,4], index: 9, kind: input, shape index: {}]   ;;  %s3650_s7 = inlined_call_operand.vmem [shape: f32[1,128], index: 7, kind: input, shape index: {}]   ;;  %s3651_s8 = inlined_call_operand.vmem [shape: f32[1,128], index: 8, kind: input, shape index: {}]   ;;  %s3652_s10 = inlined_call_operand.vmem [shape: f32[1,4], index: 10, kind: input, shape index: {}]   ;;  %s3653_s11 = inlined_call_operand.vmem [shape: f32[8,4], index: 11, kind: output, shape index: {}]  }
   0x1   :  { %2136 = vmatprep.subr.mxu0 %v2900_v0  ;;  %v39_v1 = vld [vmem:[%s3642_s1] sm:$0xff]  ;;  %2138 = vmatprep.mubr.msk.f32.mxu0 %vm2901_vm1, %v2900_v0  ;;  %v533_v31 = vld [vmem:[%s3645_s5 + $0x8] sm:$0xff]  ;;  %v2902_v35 = vmov 0.0|0.0   ;;  %v534_v36 = vld [vmem:[%s3645_s5 + $0x10] sm:$0xff]  ;;  %vm1891_vm3 = vcmask 31744  }
   0x2   :  { %v38_v2 = vld [vmem:[%s3643_s0] sm:$0xff]  ;;  %v52_v3 = vand.u32 4294901760, %v39_v1  ;;  %2121 = vmatprep.subr.mxu1 %v2900_v0  ;;  %2123 = vmatprep.mubr.msk.f32.mxu1 %vm2901_vm1, %v2900_v0  ;;  %v500_v15 = vand.u32 127, %v499_v14  ;;  %v559_v33 = vand.u32 4294901760, %v533_v31  ;;  %v535_v37 = vld [vmem:[%s3645_s5 + $0x18] sm:$0xff]  ;;  %v562_v38 = vand.u32 4294901760, %v534_v36 }
   0x3   :  { %v49_v4 = vsel %vm47_vm0, %v38_v2, 0  ;;  %v1897_v18 = vld [vmem:[%s3644_s2] ss:$0 sm:$0xff]  ;;  %v565_v39 = vand.u32 4294901760, %v535_v37  ;;  %v537_v42 = vld [vmem:[%s3645_s5 + $0x28] sm:$0xff]  ;;  %v538_v46 = vld [vmem:[%s3645_s5 + $0x30] sm:$0xff] }
   0x4   :  { %v117_v5 = vand.u32 4294901760, %v49_v4  ;;  %v129_v6 = vsub.f32 %v39_v1, %v52_v3  ;;  %2137 = vmatpush3.msra.mxu0 %v52_v3  ;;  %2122 = vmatpush3.msra.mxu1 %v52_v3  ;;  %vm501_vm2 = vcmp.lt.s32.totalorder %v500_v15, 32  ;;  %v532_v30 = vld [vmem:[%s3645_s5] sm:$0xff]  ;;  %v571_v44 = vand.u32 4294901760, %v537_v42  ;;  %v539_v47 = vld [vmem:[%s3645_s5 + $0x38] sm:$0xff]  ;;  %v541_v52 = vld [vmem:[%s3645_s5 + $0x48] sm:$0xff] }
   0x5   :  { %2126 = vmatprep.subr.mxu1 %v2900_v0  ;;  %2141 = vmatprep.subr.mxu0 %v2900_v0  ;;  %v2995_v22 = vsel %vm501_vm2, 1.0, %v2900_v0  ;;  %v556_v32 = vand.u32 4294901760, %v532_v30  ;;  %v3021_v40 = vpack.c.bf16 %v565_v39, %v562_v38  ;;  %v536_v41 = vld [vmem:[%s3645_s5 + $0x20] sm:$0xff]  ;;  %v574_v48 = vand.u32 4294901760, %v538_v46  ;;  %v542_v56 = vld [vmem:[%s3645_s5 + $0x50] sm:$0xff]  ;;  %v543_v57 = vld [vmem:[%s3645_s5 + $0x58] sm:$0xff] }
   0x6   :  { %v118_v7 = vsub.f32 %v49_v4, %v117_v5  ;;  %v130_v8 = vand.u32 4294901760, %v129_v6  ;;  %v568_v43 = vand.u32 4294901760, %v536_v41  ;;  %v577_v49 = vand.u32 4294901760, %v539_v47  ;;  %v540_v51 = vld [vmem:[%s3645_s5 + $0x40] sm:$0xff]  ;;  %v545_v63 = vld [vmem:[%s3645_s5 + $0x68] sm:$0xff]  ;;  %v546_v1 = vld [vmem:[%s3645_s5 + $0x70] sm:$0xff] }
   0x7   :  { %v3009_v34 = vpack.c.bf16 %v559_v33, %v556_v32  ;;  %v580_v53 = vand.u32 4294901760, %v540_v51  ;;  %v583_v54 = vand.u32 4294901760, %v541_v52  ;;  %v3059_v58 = vsub.f32 %v532_v30, %v556_v32  ;;  %v544_v62 = vld [vmem:[%s3645_s5 + $0x60] sm:$0xff] }
   0x8   :  { %v119_v9 = vand.u32 4294901760, %v118_v7  ;;  %v131_v10 = vsub.f32 %v129_v6, %v130_v8  ;;  %v3031_v45 = vpack.c.bf16 %v571_v44, %v568_v43  ;;  %v3041_v50 = vpack.c.bf16 %v577_v49, %v574_v48 }
   0x9   :  { %v3051_v55 = vpack.c.bf16 %v583_v54, %v580_v53  ;;  %v3061_v59 = vsub.f32 %v533_v31, %v559_v33  ;;  %v3063_v60 = vsub.f32 %v534_v36, %v562_v38  ;;  %v3065_v61 = vsub.f32 %v535_v37, %v565_v39 }
   0xa   :  { %2139 = vmatmul.mubr.f32.vlgmr.msra.gmra.mrb[0].mxu0 %v119_v9  ;;  %v120_v11 = vsub.f32 %v118_v7, %v119_v9  ;;  %v132_v12 = vand.u32 4294901760, %v131_v10  ;;  %v3077_v2 = vsub.f32 %v536_v41, %v568_v43  ;;  %v3081_v4 = vsub.f32 %v538_v46, %v574_v48 }
   0xb   :  { %2142 = vmatpush3.msra.mxu0 %v130_v8  ;;  %2143 = vmatprep.mubr.msk.f32.mxu0 %vm2901_vm1, %v2900_v0  ;;  %v3091_v8 = vsub.f32 %v541_v52, %v583_v54  ;;  %v586_v9 = vand.u32 4294901760, %v542_v56  ;;  %v589_v10 = vand.u32 4294901760, %v543_v57  ;;  %v663_v32 = vand.u32 4294901760, %v3063_v60 }
   0xc   :  { %v121_v13 = vand.u32 4294901760, %v120_v11  ;;  %2146 = vmatprep.subr.mxu0 %v2900_v0  ;;  %v592_v11 = vand.u32 4294901760, %v544_v62  ;;  %v670_v33 = vand.u32 4294901760, %v3065_v61 }
   0xd   :  { %v3093_v14 = vpack.c.bf16 %v589_v10, %v586_v9  ;;  %v3095_v15 = vsub.f32 %v542_v56, %v586_v9  ;;  %v664_v37 = vsub.f32 %v3063_v60, %v663_v32 }
   0xe   :  { %2124 = vmatmul.mubr.f32.vlgmr.msra.gmra.mrb[0].mxu1 %v121_v13  ;;  %v598_v13 = vand.u32 4294901760, %v546_v1  ;;  %v671_v38 = vsub.f32 %v3065_v61, %v670_v33 }
   0xf   :  { %2127 = vmatpush3.msra.mxu1 %v132_v12  ;;  %2128 = vmatprep.mubr.msk.f32.mxu1 %vm2901_vm1, %v2900_v0  ;;  %v595_v12 = vand.u32 4294901760, %v545_v63  ;;  %v665_v39 = vand.u32 4294901760, %v664_v37 }
  0x10   :  { %2131 = vmatprep.subr.mxu1 %v2900_v0  ;;  %v672_v41 = vand.u32 4294901760, %v671_v38 }
  0x12   :  { %2144 = vmatmul.mubr.f32.vlgmr.msra.gmra.mrb[0].mxu0 %v117_v5 }
  0x13   :  { %2147 = vmatpush3.msra.mxu0 %v52_v3  ;;  %2148 = vmatprep.mubr.msk.f32.mxu0 %vm2901_vm1, %v2900_v0  ;;  %v3079_v3 = vsub.f32 %v537_v42, %v571_v44  ;;  %v677_v42 = vand.u32 4294901760, %v3077_v2  ;;  %v3137_v44 = vpack.c.bf16 %v672_v41, %v665_v39 }
  0x14   :  { %2715 = vmatprep.subr.bf16.mxu0 %v2902_v35 }
  0x15   :  { %v684_v43 = vand.u32 4294901760, %v3079_v3  ;;  %v678_v46 = vsub.f32 %v3077_v2, %v677_v42 }
  0x16   :  { %2129 = vmatmul.mubr.f32.vlgmr.msra.gmra.mrb[0].mxu1 %v117_v5 }
  0x17   :  { %2132 = vmatpush3.msra.mxu1 %v129_v6  ;;  %2133 = vmatprep.mubr.msk.f32.mxu1 %vm2901_vm1, %v2900_v0  ;;  %v547_v6 = vld [vmem:[%s3645_s5 + $0x78] sm:$0xff]  ;;  %v679_v48 = vand.u32 4294901760, %v678_v46 }
  0x18   :  { %2571 = vmatprep.subr.bf16.mxu1 %v2902_v35 }
  0x1a   :  { %2149 = vmatmul.mubr.f32.vlgmr.msra.gmra.mrb[0].mxu0 %v117_v5  ;;  %v3083_v5 = vsub.f32 %v539_v47, %v577_v49  ;;  %v685_v47 = vsub.f32 %v3079_v3, %v684_v43 }
  0x1b   :  { %2393 = vmatprep.mubr.msk.f32.mxu0 %vm2901_vm1, %v2900_v0 }
  0x1c   :  { %v686_v49 = vand.u32 4294901760, %v685_v47  ;;  %v698_v52 = vand.u32 4294901760, %v3083_v5 }
  0x1e   :  { %2134 = vmatmul.mubr.f32.vlgmr.msra.gmra.mrb[0].mxu1 %v118_v7  ;;  %v3089_v7 = vsub.f32 %v540_v51, %v580_v53  ;;  %v691_v51 = vand.u32 4294901760, %v3081_v4  ;;  %v3147_v53 = vpack.c.bf16 %v686_v49, %v679_v48  ;;  %v699_v56 = vsub.f32 %v3083_v5, %v698_v52 }
  0x1f   :  { %2183 = vmatprep.mubr.msk.f32.mxu1 %vm2901_vm1, %v2900_v0  ;;  %2573 = vmatpush3.bf16.msra.mxu1 %v3009_v34 }
  0x20   :  { %2574 = vmatprep.subr.bf16.mxu1 %v2902_v35  ;;  %v692_v54 = vsub.f32 %v3081_v4, %v691_v51 }
  0x23   :  { %2576 = vmatpush3.bf16.msra.mxu1 %v3021_v40 }
  0x24   :  { %2577 = vmatprep.subr.bf16.mxu1 %v2902_v35 }
  0x27   :  { %2579 = vmatpush3.bf16.msra.mxu1 %v3031_v45 }
  0x28   :  { %2580 = vmatprep.subr.bf16.mxu1 %v2902_v35 }
  0x2b   :  { %2582 = vmatpush3.bf16.msra.mxu1 %v3041_v50 }
  0x2c   :  { %2583 = vmatprep.subr.bf16.mxu1 %v2902_v35 }
  0x2f   :  { %2585 = vmatpush3.bf16.msra.mxu1 %v3051_v55 }
  0x30   :  { %2586 = vmatprep.subr.bf16.mxu1 %v2902_v35 }
  0x33   :  { %2588 = vmatpush3.bf16.msra.mxu1 %v3093_v14 }
  0x34   :  { %2589 = vmatprep.subr.bf16.mxu1 %v2902_v35 }
  0xed   :  { %v493_v16 = vpop.f32.mrb[0].mxu0 }
  0xee   :  { %v2150_v17 = vpop.f32.mrb[1].mxu0 }
  0xef   :  { %v601_v17 = vand.u32 4294901760, %v547_v6 }
  0xf1   :  { %v273_v19 = vpop.f32.mrb[0].mxu1 }
  0xf2   :  { %v2859_v20 = vadd.f32 %v1897_v18, %v273_v19  ;;  %v2135_v21 = vpop.f32.mrb[1].mxu1  ;;  %v3099_v18 = vsub.f32 %v544_v62, %v592_v11  ;;  %v3101_v19 = vsub.f32 %v545_v63, %v595_v12  ;;  %v700_v62 = vand.u32 4294901760, %v699_v56 }
  0xf3   :  { %v3106_v21 = vsub.f32 %v546_v1, %v598_v13  ;;  %v3661_v63 = vand.u32 4294901760, %v3089_v7  ;;  %v3660_v1 = vand.u32 4294901760, %v3091_v8 }
  0xf4   :  { %v2860_v23 = vadd.f32 %v2859_v20, %v493_v16  ;;  %v3097_v16 = vsub.f32 %v543_v57, %v589_v10  ;;  %v3104_v20 = vpack.c.bf16 %v595_v12, %v592_v11  ;;  %v693_v57 = vand.u32 4294901760, %v692_v54 }
  0xf5   :  { %v706_v9 = vsub.f32 %v3089_v7, %v3661_v63  ;;  %v713_v10 = vsub.f32 %v3091_v8, %v3660_v1  ;;  %v3657_v38 = vand.u32 4294901760, %v3099_v18  ;;  %v3656_v39 = vand.u32 4294901760, %v3101_v19 }
  0xf6   :  { %v504_v24 = vmul.f32 %v2860_v23, %v2995_v22  ;;  %2591 = vmatpush3.bf16.msra.mxu1 %v3104_v20  ;;  %v3655_v54 = vand.u32 4294901760, %v3106_v21 }
  0xf7   :  { %2592 = vmatprep.subr.bf16.mxu1 %v2902_v35  ;;  %v707_v11 = vand.u32 4294901760, %v706_v9  ;;  %v714_v12 = vand.u32 4294901760, %v713_v10  ;;  %v734_v46 = vsub.f32 %v3099_v18, %v3657_v38  ;;  %v741_v47 = vsub.f32 %v3101_v19, %v3656_v39  ;;  %v1900_v39 = vld [vmem:[%s3647_s4] ss:$0 sm:$0xff] }
  0xf8   :  { %505 = vadd.xlane.f32.xlu0 %v504_v24  ;;  %v649_v24 = vand.u32 4294901760, %v3059_v58 }
  0xf9   :  { %v735_v48 = vand.u32 4294901760, %v734_v46  ;;  %v742_v49 = vand.u32 4294901760, %v741_v47  ;;  %v2632_v46 = vpack.c.bf16 %v3091_v8, %v3089_v7  ;;  %v2635_v47 = vpack.c.bf16 %v3097_v16, %v3095_v15 }
 0x185   :  { %v506_v25 = vpop.xlane.xlu0 %505 }
 0x186   :  { %v507_v26 = vmul.f32 0.03125, %v506_v25  ;;  %v656_v25 = vand.u32 4294901760, %v3061_v59 }
 0x188   :  { %v2998_v27 = vsub.f32 %v2860_v23, %v507_v26  ;;  %v3108_v23 = vsub.f32 %v547_v6, %v601_v17  ;;  %v3114_v26 = vpack.c.bf16 %v601_v17, %v598_v13  ;;  %v2605_v6 = vpack.c.bf16 %v700_v62, %v693_v57 }
 0x189   :  { %v3659_v13 = vand.u32 4294901760, %v3095_v15  ;;  %v3658_v17 = vand.u32 4294901760, %v3097_v16  ;;  %v2614_v57 = vpack.c.bf16 %v742_v49, %v735_v48  ;;  %v748_v62 = vsub.f32 %v3106_v21, %v3655_v54 }
 0x18a   :  { %v509_v28 = vmul.f32 %v2998_v27, %v2998_v27  ;;  %2594 = vmatpush3.bf16.msra.mxu1 %v3114_v26  ;;  %v3654_v56 = vand.u32 4294901760, %v3108_v23  ;;  %v2638_v48 = vpack.c.bf16 %v3101_v19, %v3099_v18  ;;  %v2641_v49 = vpack.c.bf16 %v3108_v23, %v3106_v21 }
 0x18b   :  { %2595 = vmatprep.subr.bf16.mxu1 %v2902_v35  ;;  %v749_v10 = vand.u32 4294901760, %v748_v62 }
 0x18c   :  { %v510_v29 = vmul.f32 %v2995_v22, %v509_v28  ;;  %v650_v28 = vsub.f32 %v3059_v58, %v649_v24  ;;  %v755_v9 = vsub.f32 %v3108_v23, %v3654_v56  ;;  %v1899_v56 = vld [vmem:[%s3646_s3] ss:$0 sm:$0xff] }
 0x18e   :  { %511 = vadd.xlane.f32.xlu0 %v510_v29  ;;  %v657_v29 = vsub.f32 %v3061_v59, %v656_v25  ;;  %v651_v30 = vand.u32 4294901760, %v650_v28  ;;  %v2608_v28 = vpack.c.bf16 %v714_v12, %v707_v11  ;;  %v756_v11 = vand.u32 4294901760, %v755_v9 }
 0x190   :  { %v658_v31 = vand.u32 4294901760, %v657_v29  ;;  %v720_v29 = vsub.f32 %v3095_v15, %v3659_v13  ;;  %v2617_v12 = vpack.c.bf16 %v756_v11, %v749_v10 }
 0x192   :  { %v3126_v36 = vpack.c.bf16 %v658_v31, %v651_v30  ;;  %v727_v30 = vsub.f32 %v3097_v16, %v3658_v17  ;;  %v721_v31 = vand.u32 4294901760, %v720_v29  ;;  %v2620_v29 = vpack.c.bf16 %v3061_v59, %v3059_v58 }
 0x193   :  { %v2674_v58 = vpack.c.bf16 %v684_v43, %v677_v42  ;;  %v2677_v59 = vpack.c.bf16 %v698_v52, %v691_v51  ;;  %v1228_v43 = vld [vmem:[%s3649_s9 + $0x10] sm:$0xff] }
 0x194   :  { %v728_v37 = vand.u32 4294901760, %v727_v30  ;;  %v2623_v30 = vpack.c.bf16 %v3065_v61, %v3063_v60  ;;  %v3669_v60 = vand.u32 4294901760, %v3089_v7  ;;  %v3670_v61 = vand.u32 4294901760, %v3091_v8 }
 0x195   :  { %v3675_v7 = vand.u32 4294901760, %v3106_v21  ;;  %v3676_v8 = vand.u32 4294901760, %v3108_v23  ;;  %v1227_v21 = vld [vmem:[%s3649_s9 + $0x8] sm:$0xff] }
 0x196   :  { %v2611_v41 = vpack.c.bf16 %v728_v37, %v721_v31  ;;  %v2626_v31 = vpack.c.bf16 %v3079_v3, %v3077_v2  ;;  %v2629_v37 = vpack.c.bf16 %v3083_v5, %v3081_v4  ;;  %v3671_v2 = vand.u32 4294901760, %v3095_v15 }
 0x197   :  { %v3672_v3 = vand.u32 4294901760, %v3097_v16  ;;  %v3673_v4 = vand.u32 4294901760, %v3099_v18  ;;  %v3674_v5 = vand.u32 4294901760, %v3101_v19 }
 0x21b   :  { %v512_v62 = vpop.xlane.xlu0 %511 }
 0x21c   :  { %v513_v9 = vmul.f32 0.03125, %v512_v62 }
 0x21e   :  { %v514_v10 = vadd.f32 1e-05, %v513_v9 }
 0x220   :  { %2894 = vrsqrt.f32 %v514_v10 }
 0x22a   :  { %v2895_v11 = vpop.eup %2894 }
 0x22b   :  { %v516_v54 = vmul.f32 %v2895_v11, %v2998_v27  ;;  %v2668_v27 = vpack.c.bf16 %v656_v25, %v649_v24  ;;  %v2680_v24 = vpack.c.bf16 %v3670_v61, %v3669_v60  ;;  %v2683_v25 = vpack.c.bf16 %v3672_v3, %v3671_v2  ;;  %v1239_v11 = vld [vmem:[%s3649_s9 + $0x68] sm:$0xff] }
 0x22c   :  { %v1289_v3 = vand.u32 4294901760, %v1239_v11 }
 0x22d   :  { %v523_v38 = vmul.f32 %v1899_v56, %v516_v54  ;;  %v1234_v54 = vld [vmem:[%s3649_s9 + $0x40] sm:$0xff]  ;;  %v1235_v56 = vld [vmem:[%s3649_s9 + $0x48] sm:$0xff] }
 0x22f   :  { %v530_v17 = vadd.f32 %v1900_v39, %v523_v38 }
 0x231   :  { %v531_v13 = vmax.f32 %v530_v17, 0.0  ;;  %v1232_v17 = vld [vmem:[%s3649_s9 + $0x30] sm:$0xff] }
 0x232   :  { %v1268_v38 = vand.u32 4294901760, %v1232_v17 }
 0x233   :  { %v3210_v1 = vand.u32 4294901760, %v531_v13 }
 0x235   :  { %v637_v62 = vsub.f32 %v531_v13, %v3210_v1 }
 0x237   :  { %v638_v9 = vand.u32 4294901760, %v637_v62 }
 0x239   :  { %v639_v10 = vsub.f32 %v637_v62, %v638_v9 }
 0x23b   :  { %v640_v63 = vand.u32 4294901760, %v639_v10 }
 0x23d   :  { %2184 = vmatmul.mubr.f32.vlgmr.msra.gmra.mrb[2].mxu1 %v640_v63  ;;  %v1231_v63 = vld [vmem:[%s3649_s9 + $0x28] sm:$0xff] }
 0x23e   :  { %2597 = vmatpush3.bf16.msra.mxu1 %v3126_v36  ;;  %2218 = vmatprep.mubr.msk.f32.mxu1 %vm2901_vm1, %v2900_v0  ;;  %v2671_v36 = vpack.c.bf16 %v670_v33, %v663_v32  ;;  %v2686_v32 = vpack.c.bf16 %v3674_v5, %v3673_v4  ;;  %v2689_v33 = vpack.c.bf16 %v3676_v8, %v3675_v7 }
 0x23f   :  { %2598 = vmatprep.subr.bf16.mxu1 %v2902_v35 }
 0x242   :  { %2600 = vmatpush3.bf16.msra.mxu1 %v3137_v44  ;;  %v1256_v44 = vand.u32 4294901760, %v1228_v43 }
 0x243   :  { %2601 = vmatprep.subr.bf16.mxu1 %v2902_v35 }
 0x246   :  { %2603 = vmatpush3.bf16.msra.mxu1 %v3147_v53  ;;  %v1230_v53 = vld [vmem:[%s3649_s9 + $0x20] sm:$0xff] }
 0x247   :  { %2604 = vmatprep.subr.bf16.mxu1 %v2902_v35 }
 0x24a   :  { %2606 = vmatpush3.bf16.msra.mxu1 %v2605_v6  ;;  %v1265_v6 = vand.u32 4294901760, %v1231_v63 }
 0x24b   :  { %2607 = vmatprep.subr.bf16.mxu1 %v2902_v35 }
 0x24c   :  { %v3399_v10 = vsub.f32 %v1231_v63, %v1265_v6 }
 0x24e   :  { %2609 = vmatpush3.bf16.msra.mxu1 %v2608_v28  ;;  %v1233_v28 = vld [vmem:[%s3649_s9 + $0x38] sm:$0xff]  ;;  %v1378_v63 = vand.u32 4294901760, %v3399_v10 }
 0x24f   :  { %2610 = vmatprep.subr.bf16.mxu1 %v2902_v35  ;;  %v1271_v39 = vand.u32 4294901760, %v1233_v28 }
 0x252   :  { %2612 = vmatpush3.bf16.msra.mxu1 %v2611_v41  ;;  %v3361_v41 = vpack.c.bf16 %v1271_v39, %v1268_v38 }
 0x253   :  { %2613 = vmatprep.subr.bf16.mxu1 %v2902_v35 }
 0x256   :  { %2615 = vmatpush3.bf16.msra.mxu1 %v2614_v57  ;;  %v1274_v57 = vand.u32 4294901760, %v1234_v54 }
 0x257   :  { %2616 = vmatprep.subr.bf16.mxu1 %v2902_v35 }
 0x25a   :  { %2618 = vmatpush3.bf16.msra.mxu1 %v2617_v12  ;;  %v1277_v12 = vand.u32 4294901760, %v1235_v56 }
 0x25b   :  { %2619 = vmatprep.subr.bf16.mxu1 %v2902_v35 }
 0x25c   :  { %v3411_v60 = vsub.f32 %v1235_v56, %v1277_v12 }
 0x25d   :  { %2219 = vmatmul.mubr.f32.vlgmr.msra.gmra.mrb[2].mxu1 %v3210_v1 }
 0x25e   :  { %2621 = vmatpush3.bf16.msra.mxu1 %v2620_v29  ;;  %2253 = vmatprep.mubr.msk.f32.mxu1 %vm2901_vm1, %v2900_v0  ;;  %v3371_v29 = vpack.c.bf16 %v1277_v12, %v1274_v57 }
 0x25f   :  { %2622 = vmatprep.subr.bf16.mxu1 %v2902_v35 }
 0x262   :  { %2624 = vmatpush3.bf16.msra.mxu1 %v2623_v30  ;;  %v1236_v30 = vld [vmem:[%s3649_s9 + $0x50] sm:$0xff] }
 0x263   :  { %2625 = vmatprep.subr.bf16.mxu1 %v2902_v35  ;;  %v1280_v61 = vand.u32 4294901760, %v1236_v30 }
 0x265   :  { %v3415_v5 = vsub.f32 %v1236_v30, %v1280_v61 }
 0x266   :  { %2627 = vmatpush3.bf16.msra.mxu1 %v2626_v31  ;;  %v1237_v31 = vld [vmem:[%s3649_s9 + $0x58] sm:$0xff] }
 0x267   :  { %2628 = vmatprep.subr.bf16.mxu1 %v2902_v35 }
 0x26a   :  { %2630 = vmatpush3.bf16.msra.mxu1 %v2629_v37 }
 0x26b   :  { %2631 = vmatprep.subr.bf16.mxu1 %v2902_v35 }
 0x26e   :  { %2633 = vmatpush3.bf16.msra.mxu1 %v2632_v46 }
 0x26f   :  { %2634 = vmatprep.subr.bf16.mxu1 %v2902_v35 }
 0x272   :  { %2636 = vmatpush3.bf16.msra.mxu1 %v2635_v47  ;;  %v3383_v47 = vsub.f32 %v1228_v43, %v1256_v44 }
 0x273   :  { %2637 = vmatprep.subr.bf16.mxu1 %v2902_v35 }
 0x276   :  { %2639 = vmatpush3.bf16.msra.mxu1 %v2638_v48 }
 0x277   :  { %2640 = vmatprep.subr.bf16.mxu1 %v2902_v35 }
 0x27a   :  { %2642 = vmatpush3.bf16.msra.mxu1 %v2641_v49  ;;  %v1238_v49 = vld [vmem:[%s3649_s9 + $0x60] sm:$0xff] }
 0x27b   :  { %2643 = vmatprep.subr.bf16.mxu1 %v2902_v35  ;;  %v1286_v2 = vand.u32 4294901760, %v1238_v49 }
 0x27d   :  { %2254 = vmatmul.mubr.f32.vlgmr.msra.gmra.mrb[2].mxu1 %v637_v62  ;;  %v1240_v62 = vld [vmem:[%s3649_s9 + $0x70] sm:$0xff]  ;;  %v3419_v8 = vsub.f32 %v1238_v49, %v1286_v2 }
 0x27e   :  { %2645 = vmatpush3.bf16.msra.mxu1 %v3009_v34  ;;  %2288 = vmatprep.mubr.msk.f32.mxu1 %vm2901_vm1, %v2900_v0 }
 0x27f   :  { %2646 = vmatprep.subr.bf16.mxu1 %v2902_v35 }
 0x282   :  { %2648 = vmatpush3.bf16.msra.mxu1 %v3021_v40 }
 0x283   :  { %2649 = vmatprep.subr.bf16.mxu1 %v2902_v35 }
 0x286   :  { %2651 = vmatpush3.bf16.msra.mxu1 %v3031_v45 }
 0x287   :  { %2652 = vmatprep.subr.bf16.mxu1 %v2902_v35 }
 0x28a   :  { %2654 = vmatpush3.bf16.msra.mxu1 %v3041_v50 }
 0x28b   :  { %2655 = vmatprep.subr.bf16.mxu1 %v2902_v35 }
 0x28e   :  { %2657 = vmatpush3.bf16.msra.mxu1 %v3051_v55 }
 0x28f   :  { %2658 = vmatprep.subr.bf16.mxu1 %v2902_v35 }
 0x292   :  { %2660 = vmatpush3.bf16.msra.mxu1 %v3093_v14 }
 0x293   :  { %2661 = vmatprep.subr.bf16.mxu1 %v2902_v35 }
 0x296   :  { %2663 = vmatpush3.bf16.msra.mxu1 %v3104_v20 }
 0x297   :  { %2664 = vmatprep.subr.bf16.mxu1 %v2902_v35 }
 0x29a   :  { %2666 = vmatpush3.bf16.msra.mxu1 %v3114_v26 }
 0x29b   :  { %2667 = vmatprep.subr.bf16.mxu1 %v2902_v35 }
 0x29d   :  { %2289 = vmatmul.mubr.f32.vlgmr.msra.gmra.mrb[2].mxu1 %v638_v9 }
 0x29e   :  { %2669 = vmatpush3.bf16.msra.mxu1 %v2668_v27  ;;  %2323 = vmatprep.mubr.msk.f32.mxu1 %vm2901_vm1, %v2900_v0  ;;  %v3401_v27 = vsub.f32 %v1232_v17, %v1268_v38  ;;  %v1379_v17 = vsub.f32 %v3399_v10, %v1378_v63 }
 0x29f   :  { %2670 = vmatprep.subr.bf16.mxu1 %v2902_v35 }
 0x2a0   :  { %v1380_v38 = vand.u32 4294901760, %v1379_v17 }
 0x2a2   :  { %2672 = vmatpush3.bf16.msra.mxu1 %v2671_v36  ;;  %v3403_v36 = vsub.f32 %v1233_v28, %v1271_v39  ;;  %v1385_v39 = vand.u32 4294901760, %v3401_v27 }
 0x2a3   :  { %2673 = vmatprep.subr.bf16.mxu1 %v2902_v35 }
 0x2a6   :  { %2675 = vmatpush3.bf16.msra.mxu1 %v2674_v58  ;;  %v1241_v58 = vld [vmem:[%s3649_s9 + $0x78] sm:$0xff] }
 0x2a7   :  { %2676 = vmatprep.subr.bf16.mxu1 %v2902_v35  ;;  %v1295_v7 = vand.u32 4294901760, %v1241_v58 }
 0x2aa   :  { %2678 = vmatpush3.bf16.msra.mxu1 %v2677_v59  ;;  %v3409_v59 = vsub.f32 %v1234_v54, %v1274_v57  ;;  %v1392_v54 = vand.u32 4294901760, %v3403_v36  ;;  %v1386_v57 = vsub.f32 %v3401_v27, %v1385_v39 }
 0x2ab   :  { %2679 = vmatprep.subr.bf16.mxu1 %v2902_v35 }
 0x2ac   :  { %v1393_v12 = vsub.f32 %v3403_v36, %v1392_v54  ;;  %v1387_v30 = vand.u32 4294901760, %v1386_v57  ;;  %v1399_v49 = vand.u32 4294901760, %v3409_v59 }
 0x2ae   :  { %2681 = vmatpush3.bf16.msra.mxu1 %v2680_v24  ;;  %v1283_v24 = vand.u32 4294901760, %v1237_v31 }
 0x2af   :  { %2682 = vmatprep.subr.bf16.mxu1 %v2902_v35 }
 0x2b0   :  { %v3413_v4 = vpack.c.bf16 %v1283_v24, %v1280_v61 }
 0x2b2   :  { %2684 = vmatpush3.bf16.msra.mxu1 %v2683_v25  ;;  %v1292_v25 = vand.u32 4294901760, %v1240_v62 }
 0x2b3   :  { %2685 = vmatprep.subr.bf16.mxu1 %v2902_v35 }
 0x2b6   :  { %2687 = vmatpush3.bf16.msra.mxu1 %v2686_v32  ;;  %v3417_v32 = vsub.f32 %v1237_v31, %v1283_v24  ;;  %v1394_v31 = vand.u32 4294901760, %v1393_v12 }
 0x2b7   :  { %2688 = vmatprep.subr.bf16.mxu1 %v2902_v35 }
 0x2ba   :  { %2690 = vmatpush3.bf16.msra.mxu1 %v2689_v33  ;;  %v3421_v33 = vsub.f32 %v1239_v11, %v1289_v3  ;;  %v3668_v11 = vand.u32 4294901760, %v3411_v60 }
 0x2bb   :  { %2691 = vmatprep.subr.bf16.mxu1 %v2902_v35 }
 0x2bc   :  { %v1407_v61 = vsub.f32 %v3411_v60, %v3668_v11 }
 0x2bd   :  { %2324 = vmatmul.mubr.f32.vlgmr.msra.gmra.mrb[2].mxu1 %v3210_v1 }
 0x2be   :  { %2693 = vmatpush3.bf16.msra.mxu1 %v3009_v34  ;;  %2358 = vmatprep.mubr.msk.f32.mxu1 %vm2901_vm1, %v2900_v0  ;;  %v1901_v34 = vld [vmem:[%s3648_s6] ss:$0 sm:$0xff] }
 0x2bf   :  { %2694 = vmatprep.subr.bf16.mxu1 %v2902_v35 }
 0x2c2   :  { %2696 = vmatpush3.bf16.msra.mxu1 %v3021_v40 }
 0x2c3   :  { %2697 = vmatprep.subr.bf16.mxu1 %v2902_v35 }
 0x2c6   :  { %2699 = vmatpush3.bf16.msra.mxu1 %v3031_v45 }
 0x2c7   :  { %2700 = vmatprep.subr.bf16.mxu1 %v2902_v35 }
 0x2ca   :  { %2702 = vmatpush3.bf16.msra.mxu1 %v3041_v50 }
 0x2cb   :  { %2703 = vmatprep.subr.bf16.mxu1 %v2902_v35 }
 0x2ce   :  { %2705 = vmatpush3.bf16.msra.mxu1 %v3051_v55 }
 0x2cf   :  { %2706 = vmatprep.subr.bf16.mxu1 %v2902_v35 }
 0x2d2   :  { %2708 = vmatpush3.bf16.msra.mxu1 %v3093_v14 }
 0x2d3   :  { %2709 = vmatprep.subr.bf16.mxu1 %v2902_v35 }
 0x2d6   :  { %2711 = vmatpush3.bf16.msra.mxu1 %v3104_v20  ;;  %v1226_v20 = vld [vmem:[%s3649_s9] sm:$0xff] }
 0x2d7   :  { %2712 = vmatprep.subr.bf16.mxu1 %v2902_v35  ;;  %v1250_v23 = vand.u32 4294901760, %v1226_v20 }
 0x2d9   :  { %v3379_v37 = vsub.f32 %v1226_v20, %v1250_v23 }
 0x2da   :  { %2714 = vmatpush3.bf16.msra.mxu1 %v3114_v26  ;;  %v1253_v26 = vand.u32 4294901760, %v1227_v21 }
 0x2dc   :  { %v3331_v42 = vpack.c.bf16 %v1253_v26, %v1250_v23  ;;  %v3381_v46 = vsub.f32 %v1227_v21, %v1253_v26  ;;  %v1357_v21 = vand.u32 4294901760, %v3383_v47 }
 0x2dd   :  { %2359 = vmatmul.mubr.f32.vlgmr.msra.gmra.mrb[2].mxu1 %v3210_v1  ;;  %v1262_v1 = vand.u32 4294901760, %v1230_v53 }
 0x2de   :  { %2717 = vmatpush3.bf16.msra.mxu0 %v3331_v42  ;;  %v1358_v43 = vsub.f32 %v3383_v47, %v1357_v21 }
 0x2df   :  { %2718 = vmatprep.subr.bf16.mxu0 %v2902_v35  ;;  %v3351_v13 = vpack.c.bf16 %v1265_v6, %v1262_v1  ;;  %v3397_v9 = vsub.f32 %v1230_v53, %v1262_v1 }
 0x2e1   :  { %v1371_v53 = vand.u32 4294901760, %v3397_v9 }
 0x2e3   :  { %v1372_v6 = vsub.f32 %v3397_v9, %v1371_v53 }
 0x2e5   :  { %v1373_v28 = vand.u32 4294901760, %v1372_v6 }
 0x2e7   :  { %v3467_v56 = vpack.c.bf16 %v1380_v38, %v1373_v28 }
 0x3b0   :  { %v1192_v40 = vpop.f32.mrb[2].mxu1 }
 0x3b1   :  { %v2861_v45 = vadd.f32 %v1901_v34, %v1192_v40  ;;  %v2360_v50 = vpop.f32.mrb[3].mxu1  ;;  %v3424_v34 = vpack.c.bf16 %v1289_v3, %v1286_v2  ;;  %v3426_v40 = vsub.f32 %v1240_v62, %v1292_v25  ;;  %v2749_v62 = vpack.c.bf16 %v1394_v31, %v1387_v30 }
 0x3b2   :  { %v1343_v50 = vand.u32 4294901760, %v3379_v37  ;;  %v1408_v2 = vand.u32 4294901760, %v1407_v61  ;;  %v3667_v3 = vand.u32 4294901760, %v3415_v5 }
 0x3b3   :  { %v1198_v55 = vmul.f32 %v2861_v45, %v2995_v22  ;;  %v3663_v38 = vand.u32 4294901760, %v3426_v40 }
 0x3b5   :  { %1199 = vadd.xlane.f32.xlu1 %v1198_v55  ;;  %v1350_v55 = vand.u32 4294901760, %v3381_v46  ;;  %v1442_v30 = vsub.f32 %v3426_v40, %v3663_v38  ;;  %v1903_v38 = vld [vmem:[%s3651_s8] ss:$0 sm:$0xff] }
 0x442   :  { %v1200_v14 = vpop.xlane.xlu1 %1199 }
 0x443   :  { %v1201_v15 = vmul.f32 0.03125, %v1200_v14  ;;  %v3434_v14 = vpack.c.bf16 %v1295_v7, %v1292_v25  ;;  %v3666_v25 = vand.u32 4294901760, %v3417_v32 }
 0x445   :  { %v3320_v16 = vsub.f32 %v2861_v45, %v1201_v15  ;;  %v3428_v45 = vsub.f32 %v1241_v58, %v1295_v7  ;;  %v1344_v15 = vsub.f32 %v3379_v37, %v1343_v50  ;;  %v1400_v58 = vsub.f32 %v3409_v59, %v1399_v49 }
 0x447   :  { %v1203_v18 = vmul.f32 %v3320_v16, %v3320_v16  ;;  %v1401_v24 = vand.u32 4294901760, %v1400_v58  ;;  %v3662_v57 = vand.u32 4294901760, %v3428_v45  ;;  %v1443_v58 = vand.u32 4294901760, %v1442_v30 }
 0x449   :  { %v1204_v19 = vmul.f32 %v2995_v22, %v1203_v18  ;;  %v1229_v22 = vld [vmem:[%s3649_s9 + $0x18] sm:$0xff]  ;;  %v1351_v18 = vsub.f32 %v3381_v46, %v1350_v55  ;;  %v2752_v7 = vpack.c.bf16 %v1408_v2, %v1401_v24  ;;  %v1449_v31 = vsub.f32 %v3428_v45, %v3662_v57 }
 0x44a   :  { %v1259_v51 = vand.u32 4294901760, %v1229_v22  ;;  %v2764_v2 = vpack.c.bf16 %v3381_v46, %v3379_v37  ;;  %v2818_v37 = vpack.c.bf16 %v1378_v63, %v1371_v53  ;;  %v2821_v46 = vpack.c.bf16 %v1392_v54, %v1385_v39 }
 0x44b   :  { %1205 = vadd.xlane.f32.xlu1 %v1204_v19  ;;  %v1345_v19 = vand.u32 4294901760, %v1344_v15  ;;  %v1352_v20 = vand.u32 4294901760, %v1351_v18  ;;  %v1414_v15 = vsub.f32 %v3415_v5, %v3667_v3  ;;  %v1421_v18 = vsub.f32 %v3417_v32, %v3666_v25 }
 0x44c   :  { %v3341_v52 = vpack.c.bf16 %v1259_v51, %v1256_v44  ;;  %v3385_v48 = vsub.f32 %v1229_v22, %v1259_v51  ;;  %v1359_v44 = vand.u32 4294901760, %v1358_v43  ;;  %v3665_v43 = vand.u32 4294901760, %v3419_v8 }
 0x44d   :  { %v3446_v26 = vpack.c.bf16 %v1352_v20, %v1345_v19  ;;  %v1415_v19 = vand.u32 4294901760, %v1414_v15  ;;  %v1422_v20 = vand.u32 4294901760, %v1421_v18  ;;  %v1450_v61 = vand.u32 4294901760, %v1449_v31 }
 0x44e   :  { %2720 = vmatpush3.bf16.msra.mxu0 %v3341_v52  ;;  %v1364_v23 = vand.u32 4294901760, %v3385_v48  ;;  %v2767_v15 = vpack.c.bf16 %v3385_v48, %v3383_v47  ;;  %v2770_v18 = vpack.c.bf16 %v3399_v10, %v3397_v9  ;;  %v3677_v47 = vand.u32 4294901760, %v3411_v60 }
 0x44f   :  { %2721 = vmatprep.subr.bf16.mxu0 %v2902_v35  ;;  %v2761_v24 = vpack.c.bf16 %v1450_v61, %v1443_v58  ;;  %v1902_v61 = vld [vmem:[%s3650_s7] ss:$0 sm:$0xff]  ;;  %v3678_v9 = vand.u32 4294901760, %v3415_v5  ;;  %v3679_v10 = vand.u32 4294901760, %v3417_v32 }
 0x450   :  { %v1365_v22 = vsub.f32 %v3385_v48, %v1364_v23  ;;  %v2824_v48 = vpack.c.bf16 %v3677_v47, %v1399_v49 }
 0x452   :  { %2723 = vmatpush3.bf16.msra.mxu0 %v3351_v13  ;;  %v1366_v51 = vand.u32 4294901760, %v1365_v22  ;;  %v3664_v22 = vand.u32 4294901760, %v3421_v33 }
 0x453   :  { %2724 = vmatprep.subr.bf16.mxu0 %v2902_v35 }
 0x454   :  { %v3457_v1 = vpack.c.bf16 %v1366_v51, %v1359_v44  ;;  %v2755_v44 = vpack.c.bf16 %v1422_v20, %v1415_v19  ;;  %v1428_v51 = vsub.f32 %v3419_v8, %v3665_v43  ;;  %v1435_v6 = vsub.f32 %v3421_v33, %v3664_v22 }
 0x455   :  { %v2773_v19 = vpack.c.bf16 %v3403_v36, %v3401_v27  ;;  %v2776_v20 = vpack.c.bf16 %v3411_v60, %v3409_v59  ;;  %v3680_v27 = vand.u32 4294901760, %v3419_v8  ;;  %v3681_v36 = vand.u32 4294901760, %v3421_v33 }
 0x456   :  { %2726 = vmatpush3.bf16.msra.mxu0 %v3361_v41  ;;  %v1429_v17 = vand.u32 4294901760, %v1428_v51  ;;  %v1436_v28 = vand.u32 4294901760, %v1435_v6  ;;  %v2779_v51 = vpack.c.bf16 %v3417_v32, %v3415_v5  ;;  %v2782_v6 = vpack.c.bf16 %v3421_v33, %v3419_v8 }
 0x457   :  { %2727 = vmatprep.subr.bf16.mxu0 %v2902_v35  ;;  %v3682_v59 = vand.u32 4294901760, %v3426_v40  ;;  %v3683_v60 = vand.u32 4294901760, %v3428_v45 }
 0x458   :  { %v2758_v12 = vpack.c.bf16 %v1436_v28, %v1429_v17  ;;  %v2785_v17 = vpack.c.bf16 %v3428_v45, %v3426_v40 }
 0x45a   :  { %2729 = vmatpush3.bf16.msra.mxu0 %v3371_v29 }
 0x45b   :  { %2730 = vmatprep.subr.bf16.mxu0 %v2902_v35 }
 0x45e   :  { %2732 = vmatpush3.bf16.msra.mxu0 %v3413_v4 }
 0x45f   :  { %2733 = vmatprep.subr.bf16.mxu0 %v2902_v35 }
 0x462   :  { %2735 = vmatpush3.bf16.msra.mxu0 %v3424_v34 }
 0x463   :  { %2736 = vmatprep.subr.bf16.mxu0 %v2902_v35 }
 0x466   :  { %2738 = vmatpush3.bf16.msra.mxu0 %v3434_v14 }
 0x467   :  { %2739 = vmatprep.subr.bf16.mxu0 %v2902_v35 }
 0x4d8   :  { %v1206_v28 = vpop.xlane.xlu1 %1205 }
 0x4d9   :  { %v1207_v30 = vmul.f32 0.03125, %v1206_v28 }
 0x4db   :  { %v1208_v31 = vadd.f32 1e-05, %v1207_v30 }
 0x4dd   :  { %2896 = vrsqrt.f32 %v1208_v31 }
 0x4e7   :  { %v2897_v58 = vpop.eup %2896 }
 0x4e8   :  { %v1210_v57 = vmul.f32 %v2897_v58, %v3320_v16  ;;  %v2812_v16 = vpack.c.bf16 %v1350_v55, %v1343_v50  ;;  %v2827_v50 = vpack.c.bf16 %v3679_v10, %v3678_v9  ;;  %v2830_v55 = vpack.c.bf16 %v3681_v36, %v3680_v27 }
 0x4ea   :  { %v1217_v22 = vmul.f32 %v1902_v61, %v1210_v57 }
 0x4ec   :  { %v1224_v43 = vadd.f32 %v1903_v38, %v1217_v22 }
 0x4ee   :  { %v1225_v25 = vmax.f32 %v1224_v43, 0.0 }
 0x4f0   :  { %v3530_v3 = vand.u32 4294901760, %v1225_v25 }
 0x4f2   :  { %v1331_v28 = vsub.f32 %v1225_v25, %v3530_v3 }
 0x4f4   :  { %v1332_v30 = vand.u32 4294901760, %v1331_v28 }
 0x4f6   :  { %v1333_v31 = vsub.f32 %v1331_v28, %v1332_v30 }
 0x4f8   :  { %v1334_v11 = vand.u32 4294901760, %v1333_v31 }
 0x4fa   :  { %2394 = vmatmul.mubr.f32.vlgmr.msra.gmra.mrb[2].mxu0 %v1334_v11 }
 0x4fb   :  { %2741 = vmatpush3.bf16.msra.mxu0 %v3446_v26  ;;  %2428 = vmatprep.mubr.msk.f32.mxu0 %vm2901_vm1, %v2900_v0  ;;  %v2815_v26 = vpack.c.bf16 %v1364_v23, %v1357_v21  ;;  %v2833_v21 = vpack.c.bf16 %v3683_v60, %v3682_v59 }
 0x4fc   :  { %2742 = vmatprep.subr.bf16.mxu0 %v2902_v35 }
 0x4ff   :  { %2744 = vmatpush3.bf16.msra.mxu0 %v3457_v1 }
 0x500   :  { %2745 = vmatprep.subr.bf16.mxu0 %v2902_v35 }
 0x503   :  { %2747 = vmatpush3.bf16.msra.mxu0 %v3467_v56 }
 0x504   :  { %2748 = vmatprep.subr.bf16.mxu0 %v2902_v35 }
 0x507   :  { %2750 = vmatpush3.bf16.msra.mxu0 %v2749_v62 }
 0x508   :  { %2751 = vmatprep.subr.bf16.mxu0 %v2902_v35 }
 0x50b   :  { %2753 = vmatpush3.bf16.msra.mxu0 %v2752_v7 }
 0x50c   :  { %2754 = vmatprep.subr.bf16.mxu0 %v2902_v35 }
 0x50f   :  { %2756 = vmatpush3.bf16.msra.mxu0 %v2755_v44 }
 0x510   :  { %2757 = vmatprep.subr.bf16.mxu0 %v2902_v35 }
 0x513   :  { %2759 = vmatpush3.bf16.msra.mxu0 %v2758_v12 }
 0x514   :  { %2760 = vmatprep.subr.bf16.mxu0 %v2902_v35 }
 0x517   :  { %2762 = vmatpush3.bf16.msra.mxu0 %v2761_v24 }
 0x518   :  { %2763 = vmatprep.subr.bf16.mxu0 %v2902_v35 }
 0x51a   :  { %2429 = vmatmul.mubr.f32.vlgmr.msra.gmra.mrb[2].mxu0 %v3530_v3 }
 0x51b   :  { %2765 = vmatpush3.bf16.msra.mxu0 %v2764_v2  ;;  %2463 = vmatprep.mubr.msk.f32.mxu0 %vm2901_vm1, %v2900_v0 }
 0x51c   :  { %2766 = vmatprep.subr.bf16.mxu0 %v2902_v35 }
 0x51f   :  { %2768 = vmatpush3.bf16.msra.mxu0 %v2767_v15 }
 0x520   :  { %2769 = vmatprep.subr.bf16.mxu0 %v2902_v35 }
 0x523   :  { %2771 = vmatpush3.bf16.msra.mxu0 %v2770_v18 }
 0x524   :  { %2772 = vmatprep.subr.bf16.mxu0 %v2902_v35 }
 0x527   :  { %2774 = vmatpush3.bf16.msra.mxu0 %v2773_v19 }
 0x528   :  { %2775 = vmatprep.subr.bf16.mxu0 %v2902_v35 }
 0x52b   :  { %2777 = vmatpush3.bf16.msra.mxu0 %v2776_v20 }
 0x52c   :  { %2778 = vmatprep.subr.bf16.mxu0 %v2902_v35 }
 0x52f   :  { %2780 = vmatpush3.bf16.msra.mxu0 %v2779_v51 }
 0x530   :  { %2781 = vmatprep.subr.bf16.mxu0 %v2902_v35 }
 0x533   :  { %2783 = vmatpush3.bf16.msra.mxu0 %v2782_v6 }
 0x534   :  { %2784 = vmatprep.subr.bf16.mxu0 %v2902_v35 }
 0x537   :  { %2786 = vmatpush3.bf16.msra.mxu0 %v2785_v17 }
 0x538   :  { %2787 = vmatprep.subr.bf16.mxu0 %v2902_v35 }
 0x53a   :  { %2464 = vmatmul.mubr.f32.vlgmr.msra.gmra.mrb[2].mxu0 %v1331_v28 }
 0x53b   :  { %2789 = vmatpush3.bf16.msra.mxu0 %v3331_v42  ;;  %2498 = vmatprep.mubr.msk.f32.mxu0 %vm2901_vm1, %v2900_v0 }
 0x53c   :  { %2790 = vmatprep.subr.bf16.mxu0 %v2902_v35 }
 0x53f   :  { %2792 = vmatpush3.bf16.msra.mxu0 %v3341_v52 }
 0x540   :  { %2793 = vmatprep.subr.bf16.mxu0 %v2902_v35 }
 0x543   :  { %2795 = vmatpush3.bf16.msra.mxu0 %v3351_v13 }
 0x544   :  { %2796 = vmatprep.subr.bf16.mxu0 %v2902_v35 }
 0x547   :  { %2798 = vmatpush3.bf16.msra.mxu0 %v3361_v41 }
 0x548   :  { %2799 = vmatprep.subr.bf16.mxu0 %v2902_v35 }
 0x54b   :  { %2801 = vmatpush3.bf16.msra.mxu0 %v3371_v29 }
 0x54c   :  { %2802 = vmatprep.subr.bf16.mxu0 %v2902_v35 }
 0x54f   :  { %2804 = vmatpush3.bf16.msra.mxu0 %v3413_v4 }
 0x550   :  { %2805 = vmatprep.subr.bf16.mxu0 %v2902_v35 }
 0x553   :  { %2807 = vmatpush3.bf16.msra.mxu0 %v3424_v34 }
 0x554   :  { %2808 = vmatprep.subr.bf16.mxu0 %v2902_v35 }
 0x557   :  { %2810 = vmatpush3.bf16.msra.mxu0 %v3434_v14 }
 0x558   :  { %2811 = vmatprep.subr.bf16.mxu0 %v2902_v35 }
 0x55a   :  { %2499 = vmatmul.mubr.f32.vlgmr.msra.gmra.mrb[2].mxu0 %v1332_v30 }
 0x55b   :  { %2813 = vmatpush3.bf16.msra.mxu0 %v2812_v16  ;;  %2533 = vmatprep.mubr.msk.f32.mxu0 %vm2901_vm1, %v2900_v0 }
 0x55c   :  { %2814 = vmatprep.subr.bf16.mxu0 %v2902_v35 }
 0x55f   :  { %2816 = vmatpush3.bf16.msra.mxu0 %v2815_v26 }
 0x560   :  { %2817 = vmatprep.subr.bf16.mxu0 %v2902_v35 }
 0x563   :  { %2819 = vmatpush3.bf16.msra.mxu0 %v2818_v37 }
 0x564   :  { %2820 = vmatprep.subr.bf16.mxu0 %v2902_v35 }
 0x567   :  { %2822 = vmatpush3.bf16.msra.mxu0 %v2821_v46 }
 0x568   :  { %2823 = vmatprep.subr.bf16.mxu0 %v2902_v35 }
 0x56b   :  { %2825 = vmatpush3.bf16.msra.mxu0 %v2824_v48 }
 0x56c   :  { %2826 = vmatprep.subr.bf16.mxu0 %v2902_v35 }
 0x56f   :  { %2828 = vmatpush3.bf16.msra.mxu0 %v2827_v50 }
 0x570   :  { %2829 = vmatprep.subr.bf16.mxu0 %v2902_v35 }
 0x573   :  { %2831 = vmatpush3.bf16.msra.mxu0 %v2830_v55 }
 0x574   :  { %2832 = vmatprep.subr.bf16.mxu0 %v2902_v35 }
 0x577   :  { %2834 = vmatpush3.bf16.msra.mxu0 %v2833_v21 }
 0x578   :  { %2835 = vmatprep.subr.bf16.mxu0 %v2902_v35 }
 0x57a   :  { %2534 = vmatmul.mubr.f32.vlgmr.msra.gmra.mrb[2].mxu0 %v3530_v3 }
 0x57b   :  { %2837 = vmatpush3.bf16.msra.mxu0 %v3331_v42  ;;  %2568 = vmatprep.mubr.msk.f32.mxu0 %vm2901_vm1, %v2900_v0  ;;  %v1904_v0 = vld [vmem:[%s3652_s10] ss:$0 sm:$0xff] }
 0x57c   :  { %2838 = vmatprep.subr.bf16.mxu0 %v2902_v35 }
 0x57f   :  { %2840 = vmatpush3.bf16.msra.mxu0 %v3341_v52 }
 0x580   :  { %2841 = vmatprep.subr.bf16.mxu0 %v2902_v35 }
 0x583   :  { %2843 = vmatpush3.bf16.msra.mxu0 %v3351_v13 }
 0x584   :  { %2844 = vmatprep.subr.bf16.mxu0 %v2902_v35 }
 0x587   :  { %2846 = vmatpush3.bf16.msra.mxu0 %v3361_v41 }
 0x588   :  { %2847 = vmatprep.subr.bf16.mxu0 %v2902_v35 }
 0x58b   :  { %2849 = vmatpush3.bf16.msra.mxu0 %v3371_v29 }
 0x58c   :  { %2850 = vmatprep.subr.bf16.mxu0 %v2902_v35 }
 0x58f   :  { %2852 = vmatpush3.bf16.msra.mxu0 %v3413_v4 }
 0x590   :  { %2853 = vmatprep.subr.bf16.mxu0 %v2902_v35 }
 0x593   :  { %2855 = vmatpush3.bf16.msra.mxu0 %v3424_v34 }
 0x594   :  { %2856 = vmatprep.subr.bf16.mxu0 %v2902_v35 }
 0x597   :  { %2858 = vmatpush3.bf16.msra.mxu0 %v3434_v14 }
 0x59a   :  { %2569 = vmatmul.mubr.f32.vlgmr.msra.gmra.mrb[2].mxu0 %v3530_v3 }
 0x66d   :  { %v1886_v42 = vpop.f32.mrb[2].mxu0 }
 0x66e   :  { %v2862_v52 = vadd.f32 %v1904_v0, %v1886_v42  ;;  %v2570_v13 = vpop.f32.mrb[3].mxu0 }
 0x670   :  { %2898 = vtanh.f32 %v2862_v52 }
 0x67a   :  { %v2899_v41 = vpop.eup %2898 }
 0x67b   :  { %1892 = vst.msk [vmem:[%s3653_s11] sm:$0xff] %vm1891_vm3, %v2899_v41 }

</bundles_post_ra>
